<compile_context>
chip_gen: v6e
topology: v6e:2x2x1
jax: 0.10.0
libtpu: 0.0.40
codegen_flags: <defaults>
</compile_context>

<pallas_src>
import functools

import jax
import jax.numpy as jnp
from jax.experimental import pallas as pl
from jax.experimental.pallas import tpu as pltpu

GAMMA = 2          # static, from FocalLoss(gamma=2)
_LANE = 128
_SUBLANE = 8

# TODO(synk): alpha (per-class cross-entropy weights) is None in the module
#             defaults; weighted cross-entropy is not implemented here.
# TODO(synk): reduction='none' (per-element output) is not implemented; only
#             'mean' (default) and 'sum' are supported.
# TODO(synk): vocab-scale C (>=64K classes) would need a C-tiling grid axis
#             with an online logsumexp; not needed for small classifier heads.


def _round_up(x, m):
    return ((x + m - 1) // m) * m


def _round_down(x, m):
    return max(m, (x // m) * m)


def _int_pow(x, g: int):
    """Static unrolled integer power: keeps the focal modulation on the VALU."""
    assert g >= 1
    result = None
    base = x
    while g:
        if g & 1:
            result = base if result is None else result * base
        g >>= 1
        if g:
            base = base * base
    return result


def _vmem_budget_bytes():
    """VMEM bytes to spend on the double-buffered input windows.

    Scales with the physical VMEM of the current generation (v5e/v6e: 128 MiB,
    v7x: 64 MiB per TensorCore); conservative fallback if the query fails.
    """
    cap = 64 * 1024 * 1024
    try:
        cap = int(pltpu.get_tpu_info().vmem_capacity_bytes)
    except Exception:
        pass
    return max(8 << 20, min(40 << 20, (cap * 5) // 16))


def _focal_loss_kernel(logits_ref, targets_ref, partial_ref, *,
                       n_rows, chunk, num_chunks, tiles_per_split):
    p = pl.program_id(0)          # split (parallel; shards across v7x's 2 TCs)
    j = pl.program_id(1)          # row tile within split (reduction axis, last)
    tn, c = logits_ref.shape

    @pl.when(j == 0)
    def _():
        partial_ref[...] = jnp.zeros_like(partial_ref)

    # Logical (unclamped) first row this grid step is responsible for.  The
    # DMA'd block index is clamped in the index_map, so a step whose logical
    # rows are entirely past N re-reads the last real block and is masked to
    # contribute exactly 0 below.
    tile_start = (p * tiles_per_split + j) * tn

    def chunk_body(ci, carry):
        r0 = pl.multiple_of(ci * chunk, _SUBLANE)
        # per-chunk upcast keeps live f32 temporaries to O(chunk * C) bytes
        logits = logits_ref[pl.ds(r0, chunk), :].astype(jnp.float32)   # (chunk, C)
        tgt = targets_ref[pl.ds(r0, chunk), :]                         # (chunk, 1)

        # numerically stable logsumexp
        m = jnp.max(logits, axis=-1, keepdims=True)                    # (chunk, 1)
        shifted = logits - m
        lse = jnp.log(jnp.sum(jnp.exp(shifted), axis=-1, keepdims=True))

        # gather shifted[row, target[row]] via compare+select (no f32 one-hot,
        # no log_probs temporary):  ce = lse - shifted[target]
        class_ids = jax.lax.broadcasted_iota(jnp.int32, (chunk, c), 1)
        tgt_shifted = jnp.sum(jnp.where(class_ids == tgt, shifted, 0.0),
                              axis=-1, keepdims=True)                  # (chunk, 1)
        ce = lse - tgt_shifted

        # focal modulation (1 - pt)^gamma * ce, pt = exp(-ce); gamma unrolled
        pt = jnp.exp(-ce)
        focal = _int_pow(1.0 - pt, GAMMA) * ce if GAMMA else ce

        # mask the ragged tail with a select so unspecified data in the
        # out-of-bounds rows of the last block cannot propagate NaN/inf
        row_ids = tile_start + r0 + jax.lax.broadcasted_iota(jnp.int32, (chunk, 1), 0)
        focal = jnp.where(row_ids < n_rows, focal, 0.0)

        # accumulate this chunk's contribution into the resident (8,128) block
        partial_ref[...] = partial_ref[...] + jnp.sum(focal)
        return carry

    jax.lax.fori_loop(0, num_chunks, chunk_body, 0, unroll=num_chunks <= 8)


def focal_loss(logits, targets, *, reduction="mean", split=2,
               block_rows=None, chunk_rows=512):
    """logits: (N, C) f32/bf16; targets: (N,) int class ids. Returns scalar f32.

    split=2 shards the batch over v7x's two TensorCores via the leading
    'parallel' grid axis; on single-TensorCore v5e/v6e it is a harmless
    2-iteration serial loop (pass split=1 to drop it).
    """
    n, c = logits.shape
    itemsize = jnp.dtype(logits.dtype).itemsize
    split = max(1, int(split))

    # --- per-row VMEM footprint, honest about (8,128) lane tiling ------------
    #   logits window : round_up(C,128) * itemsize bytes/row
    #   targets window: the (tn,1) int32 block lane-pads to 128 -> 512 B/row
    #   (capping tn against the padded targets window was chosen over a
    #    lane-dense (1,tn) targets layout to avoid an in-kernel lane->sublane
    #    relayout; the budget math below accounts for the full padded cost)
    logits_row_vmem = _round_up(c, _LANE) * itemsize
    targets_row_vmem = _LANE * 4
    per_row_buffered = 2 * (logits_row_vmem + targets_row_vmem)   # x2 double-buffer

    # --- tile sizing ----------------------------------------------------------
    if block_rows is None:
        tn = max(_SUBLANE, _vmem_budget_bytes() // per_row_buffered)
    else:
        tn = max(_SUBLANE, int(block_rows))
    rows_per_split = pl.cdiv(n, split)
    tn = min(tn, _round_up(rows_per_split, _SUBLANE))   # don't over-allocate small N
    tn = _round_down(tn, _SUBLANE)

    chunk = _round_down(min(int(chunk_rows), tn), _SUBLANE)
    tn = _round_down(tn, chunk)                         # tn = whole number of chunks
    num_chunks = tn // chunk

    num_blocks = pl.cdiv(n, tn)                         # real row blocks in the input
    tiles_per_split = pl.cdiv(num_blocks, split)

    targets2d = targets.astype(jnp.int32).reshape(n, 1)

    # clamp the DMA'd block index so no copy starts past the last real block;
    # the kernel masks using the *unclamped* logical row range.
    def row_block(p, j):
        return jnp.minimum(p * tiles_per_split + j, num_blocks - 1)

    # --- explicit VMEM limit: buffers + chunk temporaries + margin ------------
    buffers_bytes = per_row_buffered * tn + 2 * split * _SUBLANE * _LANE * 4
    temp_bytes = 6 * chunk * _round_up(c, _LANE) * 4
    vmem_limit = int(max(16 << 20, min(96 << 20, buffers_bytes + temp_bytes + (4 << 20))))

    # advisory cost estimate (helps XLA schedule around the custom call)
    flops = 10 * n * c
    transcendentals = n * c + 2 * n
    bytes_accessed = n * c * itemsize + n * 4 + split * _SUBLANE * _LANE * 4

    kernel = functools.partial(
        _focal_loss_kernel, n_rows=n, chunk=chunk, num_chunks=num_chunks,
        tiles_per_split=tiles_per_split)

    partials = pl.pallas_call(
        kernel,
        out_shape=jax.ShapeDtypeStruct((split, _SUBLANE, _LANE), jnp.float32),
        grid=(split, tiles_per_split),
        in_specs=[
            pl.BlockSpec((tn, c), lambda p, j: (row_block(p, j), 0)),
            pl.BlockSpec((tn, 1), lambda p, j: (row_block(p, j), 0)),
        ],
        out_specs=pl.BlockSpec((1, _SUBLANE, _LANE), lambda p, j: (p, 0, 0)),
        compiler_params=pltpu.CompilerParams(
            dimension_semantics=("parallel", "arbitrary"),
            vmem_limit_bytes=vmem_limit,
        ),
        cost_estimate=pl.CostEstimate(
            flops=flops, transcendentals=transcendentals,
            bytes_accessed=bytes_accessed),
    )(logits, targets2d)

    # each split's block holds its scalar partial sum broadcast across lanes
    total = jnp.sum(partials[:, 0, 0])
    if reduction == "mean":
        return total / jnp.float32(n)     # divide by the *global* N
    elif reduction == "sum":
        return total
    else:
        raise NotImplementedError("reduction='none' not implemented in this kernel")


def focal_loss_ref(logits, targets):
    # pure-JAX reference for sanity checking
    log_probs = jax.nn.log_softmax(logits.astype(jnp.float32), axis=-1)
    ce = -jnp.take_along_axis(log_probs, targets[:, None], axis=-1)[:, 0]
    pt = jnp.exp(-ce)
    return jnp.mean(((1.0 - pt) ** GAMMA) * ce)


if __name__ == "__main__":
    key = jax.random.PRNGKey(0)
    k_logits, k_targets = jax.random.split(key)

    N, C = 40, 32  # small classifier batch: 40 samples, 32 classes
    logits = jax.random.normal(k_logits, (N, C), dtype=jnp.float32)
    targets = jax.random.randint(k_targets, (N,), 0, C, dtype=jnp.int32)

    ref = focal_loss_ref(logits, targets)

    # tiny tiles: several row tiles per split, ragged tail + a fully-masked
    # clamped trailing tile -> exercises accumulator init and in-kernel masking
    loss_tiled = focal_loss(logits, targets, block_rows=8, chunk_rows=8)
    jax.block_until_ready(loss_tiled)
    assert jnp.allclose(loss_tiled, ref, atol=1e-5, rtol=1e-5), (loss_tiled, ref)

    # multi-chunk inner fori_loop within one tile
    loss_chunked = focal_loss(logits, targets, block_rows=16, chunk_rows=8)
    jax.block_until_ready(loss_chunked)
    assert jnp.allclose(loss_chunked, ref, atol=1e-5, rtol=1e-5), (loss_chunked, ref)

    # default auto-sized tiles (single tile per split at this size)
    loss_auto = focal_loss(logits, targets)
    jax.block_until_ready(loss_auto)
    assert jnp.allclose(loss_auto, ref, atol=1e-5, rtol=1e-5), (loss_auto, ref)

    # bf16 feed (halves HBM traffic; in-kernel math stays f32)
    logits_bf16 = logits.astype(jnp.bfloat16)
    ref_bf16 = focal_loss_ref(logits_bf16.astype(jnp.float32), targets)
    loss_bf16 = focal_loss(logits_bf16, targets)
    jax.block_until_ready(loss_bf16)
    assert jnp.allclose(loss_bf16, ref_bf16, atol=1e-4, rtol=1e-4), (loss_bf16, ref_bf16)

    print("KERNEL_OK")
</pallas_src>

<mosaic_0001>
module attributes {stable_mosaic.version = 11 : i64} {
  func.func @_focal_loss_kernel(%arg0: i32, %arg1: i32, %arg2: memref<8x32xf32, #tpu.memory_space<vmem>>, %arg3: memref<8x1xi32, #tpu.memory_space<vmem>>, %arg4: memref<1x8x128xf32, #tpu.memory_space<vmem>>) attributes {dimension_semantics = [#tpu.dimension_semantics<parallel>, #tpu.dimension_semantics<arbitrary>], iteration_bounds = array<i64: 2, 3>, scalar_prefetch = 0 : i64, scratch_operands = 0 : i64, tpu.core_type = #tpu.core_type<tc>, window_params = [{transform_indices = @transform_0, window_bounds = array<i64: 8, 32>}, {transform_indices = @transform_1, window_bounds = array<i64: 8, 1>}, {transform_indices = @transform_2, window_bounds = array<i64: 1, 8, 128>}]} {
    %c0_i32 = arith.constant 0 : i32
    %0 = arith.cmpi eq, %arg1, %c0_i32 : i32
    %1 = arith.extui %0 : i1 to i32
    %c0_i32_0 = arith.constant 0 : i32
    %2 = arith.cmpi ne, %1, %c0_i32_0 : i32
    scf.if %2 {
      %cst_17 = arith.constant 0.000000e+00 : f32
      %51 = vector.broadcast %cst_17 : f32 to vector<1x8x128xf32>
      %c0_18 = arith.constant 0 : index
      %c0_19 = arith.constant 0 : index
      %c0_20 = arith.constant 0 : index
      %52 = vector.load %arg4[%c0_18, %c0_19, %c0_20] : memref<1x8x128xf32, #tpu.memory_space<vmem>>, vector<1x8x128xf32>
      tpu.vector_store %arg4[%c0_18, %c0_19, %c0_20], %51 {strides = array<i32>} : memref<1x8x128xf32, #tpu.memory_space<vmem>>, vector<1x8x128xf32>,
    } else {
    }
    %c3_i32 = arith.constant 3 : i32
    %3 = arith.muli %arg0, %c3_i32 : i32
    %4 = arith.addi %3, %arg1 : i32
    %c8_i32 = arith.constant 8 : i32
    %5 = arith.muli %4, %c8_i32 : i32
    %c0_i32_1 = arith.constant 0 : i32
    %c8_i32_2 = arith.constant 8 : i32
    %6 = arith.muli %c0_i32_1, %c8_i32_2 : i32
    %7 = tpu.assume_multiple %6, 8 : i32
    %8 = arith.index_cast %7 : i32 to index
    %c0 = arith.constant 0 : index
    %9 = vector.load %arg2[%8, %c0] : memref<8x32xf32, #tpu.memory_space<vmem>>, vector<8x32xf32>
    %10 = arith.index_cast %7 : i32 to index
    %c0_3 = arith.constant 0 : index
    %11 = vector.load %arg3[%10, %c0_3] : memref<8x1xi32, #tpu.memory_space<vmem>>, vector<8x1xi32>
    %cst = arith.constant dense<0xFF800000> : vector<8xf32>
    %12 = vector.multi_reduction <maximumf>, %9, %cst [1] : vector<8x32xf32> to vector<8xf32>
    %13 = vector.shape_cast %12 : vector<8xf32> to vector<8x1xf32>
    %14 = vector.broadcast %13 : vector<8x1xf32> to vector<8x32xf32>
    %15 = arith.subf %9, %14 : vector<8x32xf32>
    %16 = math.exp %15 : vector<8x32xf32>
    %cst_4 = arith.constant dense<0.000000e+00> : vector<8xf32>
    %17 = vector.multi_reduction <add>, %16, %cst_4 [1] : vector<8x32xf32> to vector<8xf32>
    %18 = vector.shape_cast %17 : vector<8xf32> to vector<8x1xf32>
    %19 = math.log %18 : vector<8x1xf32>
    %20 = tpu.iota {dimensions = array<i32: 1>} : vector<8x32xi32>
    %21 = vector.broadcast %11 : vector<8x1xi32> to vector<8x32xi32>
    %22 = arith.cmpi eq, %20, %21 : vector<8x32xi32>
    %cst_5 = arith.constant 0.000000e+00 : f32
    %23 = vector.broadcast %cst_5 : f32 to vector<8x32xf32>
    %24 = arith.select %22, %15, %23 : vector<8x32xi1>, vector<8x32xf32>
    %cst_6 = arith.constant dense<0.000000e+00> : vector<8xf32>
    %25 = vector.multi_reduction <add>, %24, %cst_6 [1] : vector<8x32xf32> to vector<8xf32>
    %26 = vector.shape_cast %25 : vector<8xf32> to vector<8x1xf32>
    %27 = arith.subf %19, %26 : vector<8x1xf32>
    %cst_7 = arith.constant 0.000000e+00 : f32
    %28 = vector.broadcast %cst_7 : f32 to vector<8x1xf32>
    %29 = arith.subf %28, %27 : vector<8x1xf32>
    %30 = math.exp %29 : vector<8x1xf32>
    %cst_8 = arith.constant 1.000000e+00 : f32
    %31 = vector.broadcast %cst_8 : f32 to vector<8x1xf32>
    %32 = arith.subf %31, %30 : vector<8x1xf32>
    %33 = arith.mulf %32, %32 : vector<8x1xf32>
    %34 = arith.mulf %33, %27 : vector<8x1xf32>
    %35 = arith.addi %5, %7 : i32
    %36 = tpu.iota {dimensions = array<i32: 0>} : vector<8x1xi32>
    %37 = vector.broadcast %35 : i32 to vector<8x1xi32>
    %38 = arith.addi %37, %36 : vector<8x1xi32>
    %c40_i32 = arith.constant 40 : i32
    %39 = vector.broadcast %c40_i32 : i32 to vector<8x1xi32>
    %40 = arith.cmpi slt, %38, %39 : vector<8x1xi32>
    %cst_9 = arith.constant 0.000000e+00 : f32
    %41 = vector.broadcast %cst_9 : f32 to vector<8x1xf32>
    %42 = arith.select %40, %34, %41 : vector<8x1xi1>, vector<8x1xf32>
    %c0_10 = arith.constant 0 : index
    %c0_11 = arith.constant 0 : index
    %c0_12 = arith.constant 0 : index
    %43 = vector.load %arg4[%c0_10, %c0_11, %c0_12] : memref<1x8x128xf32, #tpu.memory_space<vmem>>, vector<1x8x128xf32>
    %44 = vector.shape_cast %42 : vector<8x1xf32> to vector<1x8x1xf32>
    %cst_13 = arith.constant dense<0.000000e+00> : vector<1xf32>
    %45 = vector.multi_reduction <add>, %44, %cst_13 [1, 2] : vector<1x8x1xf32> to vector<1xf32>
    %46 = vector.shape_cast %45 : vector<1xf32> to vector<1x1x1xf32>
    %47 = vector.extract %46[0, 0, 0] : f32 from vector<1x1x1xf32>
    %48 = vector.broadcast %47 : f32 to vector<1x8x128xf32>
    %49 = arith.addf %43, %48 : vector<1x8x128xf32>
    %c0_14 = arith.constant 0 : index
    %c0_15 = arith.constant 0 : index
    %c0_16 = arith.constant 0 : index
    %50 = vector.load %arg4[%c0_14, %c0_15, %c0_16] : memref<1x8x128xf32, #tpu.memory_space<vmem>>, vector<1x8x128xf32>
    tpu.vector_store %arg4[%c0_14, %c0_15, %c0_16], %49 {strides = array<i32>} : memref<1x8x128xf32, #tpu.memory_space<vmem>>, vector<1x8x128xf32>,
    %c1_i32 = arith.constant 1 : i32
    return
  }
  func.func @transform_0(%arg0: i32, %arg1: i32) -> (i32, i32) {
    %c3_i32 = arith.constant 3 : i32
    %0 = arith.muli %arg0, %c3_i32 : i32
    %1 = arith.addi %0, %arg1 : i32
    %c4_i32 = arith.constant 4 : i32
    %2 = arith.minsi %1, %c4_i32 : i32
    %c0_i32 = arith.constant 0 : i32
    %c0_i32_0 = arith.constant 0 : i32
    return %2, %c0_i32 : i32, i32
  }
  func.func @transform_1(%arg0: i32, %arg1: i32) -> (i32, i32) {
    %c3_i32 = arith.constant 3 : i32
    %0 = arith.muli %arg0, %c3_i32 : i32
    %1 = arith.addi %0, %arg1 : i32
    %c4_i32 = arith.constant 4 : i32
    %2 = arith.minsi %1, %c4_i32 : i32
    %c0_i32 = arith.constant 0 : i32
    %c0_i32_0 = arith.constant 0 : i32
    return %2, %c0_i32 : i32, i32
  }
  func.func @transform_2(%arg0: i32, %arg1: i32) -> (i32, i32, i32) {
    %c0_i32 = arith.constant 0 : i32
    %c0_i32_0 = arith.constant 0 : i32
    %c0_i32_1 = arith.constant 0 : i32
    return %arg0, %c0_i32, %c0_i32_0 : i32, i32, i32
  }
}

</mosaic_0001>

<bundles_post_ra>
// kernel: tpu_custom_call.1
= control target key start
LH: loop header
LB: loop body
LE: loop exit
PB: predicated region body
PF: predicated region fallthrough
CT: control target
= control target key end

     0   :  { %7 = vsyncpa [#allocation3], 0  ;;  %s736_s0 = inlined_call_operand.vmem [shape: f32[40,32], index: 0, kind: input, shape index: {}]   ;;  %s737_s1 = inlined_call_operand.vmem [shape: s32[40,1], index: 1, kind: input, shape index: {}]   ;;  %s738_s2 = inlined_call_operand.hbm [shape: f32[2,8,128], index: 2, kind: output, shape index: {}]  }
   0x1   :  { %9 = vsyncpa [#allocation3 + $0x1], 0  ;;  %s595_s9 = smov 0   ;;  %s597_s10 = smov 0  }
   0x2   :  { %s599_s11 = smov 0   ;;  %s601_s12 = smov 0  }
   0x3   :  { %s603_s13 = smov 0   ;;  %s605_s14 = smov 0  }
   0x4   :  { %s607_s15 = smov 0   ;;  %s609_s16 = smov 0  }
   0x5 LB: > { %s381_s17 = sadd.s32 4294967295, %s575_s16   ;;  %s382_s18 = sadd.s32 4294967294, %s575_s16   ;;  %s575_s16 = sphi %s609_s16, %s15_s16   ;;  %s571_s15 = sphi %s607_s15, %s747_s15   ;;  %s567_s14 = sphi %s605_s14, %s746_s14   ;;  %s563_s13 = sphi %s603_s13, %s745_s13   ;;  %s559_s12 = sphi %s601_s12, %s744_s12   ;;  %s555_s11 = sphi %s599_s11, %s743_s11   ;;  %s551_s10 = sphi %s597_s10, %s742_s10   ;;  %s547_s9 = sphi %s595_s9, %s741_s9  }
   0x6   : > { %s24_s19 = sadd.s32 1, %s567_s14  ;;  %s27_s20 = sadd.s32 1, %s571_s15 }
   0x7   : > { %p25_p0 = scmp.ge.s32.totalorder %s24_s19, 3  ;;  %p112_p1 = scmp.ne.s32.totalorder %s555_s11, %s551_s10 }
   0x8   : > { %p113_p2 = scmp.eq.s32.totalorder %s381_s17, 5  ;;  %p118_p4 = scmp.ne.s32.totalorder %s551_s10, %s547_s9 }
   0x9   : > { %s749_s19 = smov (%p25_p0, %s24_s19), 0  ;;  %s751_s20 = smov (!%p25_p0, %s27_s20), %s571_s15 }
   0xa   : > { %p644_p3 = por %p113_p2, %p112_p1  ;;  %p29_p5 = scmp.ge.s32.totalorder %s751_s20, 2 }
   0xb   : > { %p119_p6 = scmp.eq.s32.totalorder %s382_s18, 5  ;;  %p385_p7 = scmp.ge.s32.totalorder %s575_s16, 1 }
   0xc   : > { %p167_p8 = scmp.lt.s32.totalorder %s575_s16, 7  ;;  %s753_s20 = smov (%p29_p5, %s751_s20), 0 }
   0xd   : > { %p654_p9 = por %p119_p6, %p118_p4  ;;  %s99_s23 = ssub.s32 %s571_s15, %s753_s20 }
   0xe   : > { %p168_p10 = pnand %p385_p7, %p167_p8  ;;  %s102_s24 = sadd.s32 1, %s555_s11 }
   0xf   : > { %p100_p11 = scmp.eq.s32.totalorder %s99_s23, 0  ;;  %s197_s26 = sand.u32 (!%p168_p10), 1, %s551_s10  }
  0x10   : > { %171 = sbr.rel (%p168_p10) target bundleno = 588 (0x24c), region = 28  ;;  %s386_s28 = sshll.u32 (!%p168_p10), %s197_s26, 3 }
  0x11   : > { %s662_s25 = scalar_select %p100_p11, %s555_s11, %s102_s24  }
  0x12   : > { %s200_s27 = smul.u32 (!%p168_p10), 3, %s563_s13  ;;  %s679_s18 = scalar_lea.vmem (!%p168_p10), [#allocation2], %s386_s28 }
  0x13   : > { %p395_p13 = scmp.ne.s32.totalorder (!%p168_p10), %s559_s12, 0 }
  0x14   : > { %s669_s29 = sadd.s32 (!%p168_p10), %s559_s12, %s200_s27 }
  0x15   : > { %p202_p12 = scmp.lt.s32.totalorder %s669_s29, 4 }
  0x17   : > { %s203_s30 = scalar_select %p202_p12, %s669_s29, 4 }
  0x18   : > { %227 = sbr.rel (%p395_p13) target bundleno = 31 (0x1f), region = 32 }
  0x19   : > { %s755_s30 = smov (!%p202_p12, %s203_s30), 4 }
  0x1a   : > { %s390_s3 = sshll.u32 %s755_s30, 3 }
  0x1b   : > { %s207_s6 = scalar_lea.vmem %s736_s0, %s390_s3  ;;  %s219_s17 = scalar_lea.vmem %s737_s1, %s390_s3 }
  0x1d   : > { %v577_v0 = vmov 0.0  }
  0x1e   : > { %228 = vst [vmem:[%s679_s18] sm:$0xff] %v577_v0 }
  0x1f PF: > { %v232_v1 = vld [vmem:[%s207_s6] sm:$0xff]  ;;  %vm234_vm0 = vcmask 261120   ;;  %v578_v3 = vmov 0   ;;  %v246_v8 = vlaneseq  ;;  %s396_s12 = sshll.u32 %s669_s29, 3  ;;  %vm271_vm3 = vcmask 7168   ;;  %s398_s23 = sshll.u32 %s563_s13, 7 }
  0x20   : > { %v235_v2 = vsel %vm234_vm0, %v232_v1, -inf  ;;  %476 = vset.pattern.permute.xlu0 %v578_v3  ;;  %v233_v4 = vld [vmem:[%s219_s17] sm:$0xff]  ;;  %v266_v23 = vstv %s396_s12  ;;  %s299_s24 = sshll.u32 %s679_s18, 4  ;;  %s297_s30 = scalar_lea.hbm %s738_s2, %s398_s23  ;;  %s300_s24 = int_to_ptr.vmem [resolvable:$true] %s299_s24 }
  0x21   : > { %236 = vmax.xlane.f32.xlu0 %v235_v2  ;;  %v247_v9 = vand.u32 127, %v246_v8  ;;  %v265_v22 = vshrl.u32 %v246_v8, 7  ;;  %s286_s3 = scalar_lea.sflag [#allocation3], %s197_s26  ;;  %s483_s4 = scalar_lea.vmem %s300_s24, 128 }
  0x22   : > { %p484_p0 = scmp.ne.s32.totalorder %s300_s24, %s483_s4  ;;  %s579_s5 = smov [#allocation2]  }
  0x23   : > { %v267_v25 = vadd.s32 %v266_v23, %v265_v22  ;;  %s487_s6 = sshll.u32 %s579_s5, 4  ;;  %s488_s6 = int_to_ptr.vmem [resolvable:$false] %s487_s6 }
  0x24   : > { %p485_p1 = pnand %p484_p0, %p644_p3  ;;  %s489_s13 = scalar_lea.vmem %s488_s6, 256 }
  0x25   : > { %vm268_vm2 = vcmp.lt.s32.totalorder %v267_v25, 40  ;;  %v270_v38 = vld [vmem:[%s679_s18] sm:$0xff]  ;;  %p490_p4 = scmp.lt.s32.totalorder %s300_s24, %s488_s6  ;;  %p491_p5 = scmp.lt.s32.totalorder %s489_s13, %s483_s4 }
  0x26   : > { %p486_p2 = pneg %p485_p1 }
  0x27   : > { %p492_p6 = por %p491_p5, %p490_p4 }
  0x29   : > { %p493_p7 = pnand %p492_p6, %p486_p2 }
  0x37   : > { %249 = vperm.xlu0 %476, %v233_v4  }
  0xaa   : > { %v237_v5 = vpop.xlane.xlu0 %236 }
  0xab   : > { %v238_v6 = vsub.f32 %v232_v1, %v237_v5 }
  0xad   : > { %v239_v7 = vmul.f32 1.442695, %v238_v6 }
  0xaf   : > { %477 = vpow2.f32 %v239_v7 }
  0xb2   : > { %v250_v10 = vpop.permute.xlu0 %249 }
  0xb3   : > { %vm251_vm1 = vcmp.eq.s32.totalorder %v247_v9, %v250_v10 }
  0xb4   : > { %v252_v13 = vsel %vm251_vm1, %v238_v6, 0.0 }
  0xb5   : > { %v253_v14 = vsel %vm234_vm0, %v252_v13, 0.0 }
  0xbc   : > { %v478_v11 = vpop.eup %477 }
  0xbd   : > { %v241_v12 = vsel %vm234_vm0, %v478_v11, 0.0 }
  0xbe   : > { %242 = vadd.xlane.f32.xlu1 %v241_v12 }
  0xc2   : > { %254 = vadd.xlane.f32.xlu1 %v253_v14 }
 0x147   : > { %v243_v15 = vpop.xlane.xlu1 %242 }
 0x148   : > { %479 = vlog2.f32 %v243_v15 }
 0x14b   : > { %v255_v18 = vpop.xlane.xlu1 %254 }
 0x155   : > { %v480_v16 = vpop.eup %479 }
 0x156   : > { %v245_v17 = vmul.f32 0.6931472, %v480_v16 }
 0x158   : > { %v256_v19 = vsub.f32 %v245_v17, %v255_v18 }
 0x15a   : > { %v257_v20 = vsub.f32 0.0, %v256_v19 }
 0x15c   : > { %v258_v21 = vmul.f32 1.442695, %v257_v20 }
 0x15e   : > { %481 = vpow2.f32 %v258_v21 }
 0x16b   : > { %v482_v24 = vpop.eup %481 }
 0x16c   : > { %v260_v26 = vsub.f32 1.0, %v482_v24 }
 0x16e   : > { %v261_v27 = vmul.f32 %v260_v26, %v260_v26 }
 0x170   : > { %v262_v28 = vmul.f32 %v261_v27, %v256_v19 }
 0x172   : > { %v269_v29 = vsel %vm268_vm2, %v262_v28, 0.0 }
 0x173   : > { %v272_v30 = vsel %vm271_vm3, %v269_v29, 0.0 }
 0x174   : > { %273 = vadd.xlane.f32.xlu1 %v272_v30 }
 0x1fd   : > { %v274_v31 = vpop.xlane.xlu1 %273 }
 0x1fe   : > { %v275_v32 = vrot.slane %v274_v31, 4 }
 0x200   : > { %v276_v33 = vadd.f32 %v275_v32, %v274_v31 }
 0x202   : > { %v277_v34 = vrot.slane %v276_v33, 2 }
 0x204   : > { %v278_v35 = vadd.f32 %v277_v34, %v276_v33 }
 0x206   : > { %v279_v36 = vrot.slane %v278_v35, 1 }
 0x208   : > { %v280_v37 = vadd.f32 %v279_v36, %v278_v35 }
 0x20a   : > { %401 = vpush %v280_v37 }
 0x23b   : > { %s402_s27 = spop %401 }
 0x23c   : > { %v282_v39 = vstv %s402_s27 }
 0x23d   : > { %v283_v40 = vadd.f32 %v282_v39, %v270_v38 }
 0x23f   : > { %284 = vst [vmem:[%s679_s18] sm:$0xff] %v283_v40 }
 0x240   : > { %496 = shalt.err (!%p493_p7)
}
 0x241   : > { %s497_s7 = scalar_lea.hbm %s297_s30, 128  ;;  %s501_s17 = scalar_lea.hbm %s738_s2, 256 }
 0x242   : > { %p498_p8 = scmp.ne.s32.totalorder %s297_s30, %s497_s7  ;;  %p502_p12 = scmp.lt.s32.totalorder %s297_s30, %s738_s2 }
 0x243   : > { %p503_p13 = scmp.lt.s32.totalorder %s501_s17, %s497_s7 }
 0x244   : > { %p499_p10 = pnand %p498_p8, %p644_p3 }
 0x245   : > { %p504_p0 = por %p503_p13, %p502_p12 }
 0x246   : > { %p500_p11 = pneg %p499_p10 }
 0x248   : > { %p505_p1 = pnand %p504_p0, %p500_p11 }
 0x24a   : > { %508 = shalt.err (!%p505_p1)
}
 0x24b   : > { %403 = dma.vmem_to_hbm [thread:$0]  (%p644_p3), %s300_s24, 128, %s297_s30, %s286_s3  }
 0x24c PF: > { %p409_p2 = scmp.ge.s32.totalorder %s575_s16, 2  ;;  %s311_s23 = sand.u32 1, %s547_s9  }
 0x24d   : > { %s312_s27 = scalar_lea.sflag [#allocation3], %s311_s23 }
 0x24e   : > { %p406_p4 = pnand %p409_p2, %p654_p9 }
 0x250   : > { %p407_p5 = pneg %p406_p4 }
 0x252   : > { %542 = dma.done.wait (%p407_p5), %s312_s27, 128  }
 0x253   : > { %544 = vsyncadd (%p407_p5), %s312_s27, 4294967168  ;;  %s15_s16 = sadd.s32 1, %s575_s16   ;;  %s741_s9 = smov %s551_s10 }
 0x254   : > { %p12_p6 = scmp.ge.s32.totalorder %s15_s16, 8   ;;  %s742_s10 = smov %s555_s11 }
 0x255   : > { %s743_s11 = smov %s662_s25  ;;  %s744_s12 = smov %s567_s14 }
 0x256   : > { %s745_s13 = smov %s571_s15  ;;  %s746_s14 = smov %s749_s19 }
 0x257   : > { %s747_s15 = smov %s753_s20  ;;  %14 = sbr.rel (!%p12_p6) target bundleno = 5 (0x5), region = 70 }
 0x25c   :  { %317 = vsyncpa [#allocation3], 1 }
 0x25d   :  { %319 = vsyncpa [#allocation3 + $0x1], 1 }

</bundles_post_ra>
